<compile_context>
chip_gen: v6e
topology: v6e:2x2x1
jax: 0.10.0
libtpu: 0.0.40
codegen_flags: <defaults>
</compile_context>

<pallas_src>
import functools

import jax
import jax.numpy as jnp
import numpy as np
from jax.experimental import pallas as pl
from jax.experimental.pallas import tpu as pltpu

_PAD_COORD = 1.0e6  # sentinel for padded point rows -> dis ~ 2e12 -> exp == 0


def _round_up(v, m):
    return ((v + m - 1) // m) * m


def _next_pow2_bucket(n):
    # power-of-two bucket, at least 8 (one f32 sublane tile)
    return 1 << max(3, int(n - 1).bit_length())


def _choose_tile_p(cc, n_pad):
    cc128 = _round_up(cc, 128)
    # keep ~4 live (n_pad, tile) f32 slabs (dis, e, double-buffered out) <= ~8 MiB
    budget_lanes = (8 << 20) // (4 * 4 * max(n_pad, 8))
    tile = min(cc128, 2048, max(128, (budget_lanes // 128) * 128))
    return tile


def _post_prob_kernel(st_ref, x_ref, y_ref, cx_ref, cy_ref, out_ref, *,
                      inv_two_sigma_sq, bg_ratio, n_pad, use_background):
    b = pl.program_id(0)

    x = x_ref[...]                     # (N_pad, 1); padded rows hold _PAD_COORD
    y = y_ref[...]                     # (N_pad, 1)
    cx = cx_ref[...]                   # (1, TILE_P)
    cy = cy_ref[...]                   # (1, TILE_P)

    dx = cx - x                        # (N_pad, TILE_P)
    dy = cy - y
    dis = dx * dx + dy * dy            # squared distance, >= 0 by construction
                                       # padded rows ~2e12 -> softmax weight 0

    # Single full sublane reduction over the point axis; max(logit) = -min(dis)*c.
    min_dis = jnp.min(dis, axis=0, keepdims=True)           # (1, TILE_P)

    if use_background:
        st = st_ref[b]
        d = st * bg_ratio
        diff = d - jnp.sqrt(min_dis)                         # min_dis >= 0, no clamp
        bg_dis = diff * diff                                 # (1, TILE_P)
        md = jnp.minimum(min_dis, bg_dis)                    # shift = -md * c
        # shift + scale fused: logit - max = (md - dis) * c
        e = jnp.exp((md - dis) * inv_two_sigma_sq)           # padded rows -> 0
        e_bg = jnp.exp((md - bg_dis) * inv_two_sigma_sq)     # (1, TILE_P)
        denom = jnp.sum(e, axis=0, keepdims=True) + e_bg
        # exact reciprocal (approx=True EUP recip would eat the 1e-5 test tol)
        inv_denom = 1.0 / denom
        out_ref[0:n_pad, :] = e * inv_denom
        # Background row at fixed sublane n_pad; rows n_pad+1..n_pad+7 are
        # duplicates so this is a full, unmasked 8-sublane store.
        bg_prob = e_bg * inv_denom                           # (1, TILE_P)
        out_ref[n_pad:n_pad + 8, :] = jnp.broadcast_to(
            bg_prob, (8, bg_prob.shape[1]))
    else:
        e = jnp.exp((min_dis - dis) * inv_two_sigma_sq)
        denom = jnp.sum(e, axis=0, keepdims=True)
        out_ref[...] = e * (1.0 / denom)


def _post_prob_batched(st_sz, xs, ys, cx, cy, *, sigma, bg_ratio,
                       use_background, n_pad, tile_p):
    """One pallas_call for all non-empty images.

    xs, ys: (B, N_pad, 1) f32 padded coordinates (pad rows = _PAD_COORD)
    cx, cy: (1, CC_pad) f32 flattened grid coordinates (lane-padded)
    st_sz:  (B,) f32  -> scalar-prefetched into SMEM
    returns (B, OUT_ROWS, CC_pad) f32
    """
    B = xs.shape[0]
    cc_pad = cx.shape[1]
    out_rows = n_pad + 8 if use_background else n_pad
    grid = (B, cc_pad // tile_p)

    kernel = functools.partial(
        _post_prob_kernel,
        inv_two_sigma_sq=float(1.0 / (2.0 * sigma * sigma)),
        bg_ratio=float(bg_ratio),
        n_pad=int(n_pad),
        use_background=bool(use_background))

    return pl.pallas_call(
        kernel,
        out_shape=jax.ShapeDtypeStruct((B, out_rows, cc_pad), jnp.float32),
        grid_spec=pltpu.PrefetchScalarGridSpec(
            num_scalar_prefetch=1,          # st_sizes -> SMEM
            grid=grid,
            in_specs=[
                pl.BlockSpec((None, n_pad, 1), lambda b, p, st: (b, 0, 0)),  # x
                pl.BlockSpec((None, n_pad, 1), lambda b, p, st: (b, 0, 0)),  # y
                pl.BlockSpec((1, tile_p), lambda b, p, st: (0, p)),          # cx
                pl.BlockSpec((1, tile_p), lambda b, p, st: (0, p)),          # cy
            ],
            out_specs=pl.BlockSpec((None, out_rows, tile_p),
                                   lambda b, p, st: (b, 0, p)),
        ),
        compiler_params=pltpu.CompilerParams(
            dimension_semantics=("parallel", "parallel")),
    )(st_sz, xs, ys, cx, cy)


def post_prob_forward(points_list, st_sizes, *, sigma, c_size, stride,
                      background_ratio, use_background):
    """Mirrors Post_Prob.forward: returns a list of per-image prob arrays (or None)."""
    assert c_size % stride == 0
    C = c_size // stride
    CC = C * C
    cood = np.arange(0, c_size, step=stride, dtype=np.float32) + stride / 2.0  # (C,)

    counts = [int(np.asarray(p).shape[0]) for p in points_list]
    idxs = [i for i, n in enumerate(counts) if n > 0]
    if not idxs:
        return [None for _ in points_list]

    B = len(idxs)
    n_max = max(counts[i] for i in idxs)
    n_pad = _next_pow2_bucket(n_max)            # bucketed -> bounded recompiles
    tile_p = _choose_tile_p(CC, n_pad)
    cc_pad = _round_up(CC, tile_p)              # lane-dense, multiple of tile_p

    # flattened (C, C) grid: pixel p = i*C + j -> (y = cood[i], x = cood[j])
    cood_y_flat = np.repeat(cood, C)
    cood_x_flat = np.tile(cood, C)
    cx_np = np.zeros((1, cc_pad), np.float32)
    cy_np = np.zeros((1, cc_pad), np.float32)
    cx_np[0, :CC] = cood_x_flat
    cy_np[0, :CC] = cood_y_flat

    # Padded point rows get a huge sentinel coordinate so their softmax weight
    # underflows to exactly 0 (no in-kernel row masking needed).
    xs_np = np.full((B, n_pad, 1), _PAD_COORD, np.float32)
    ys_np = np.full((B, n_pad, 1), _PAD_COORD, np.float32)
    st_np = np.zeros((B,), np.float32)
    for bi, i in enumerate(idxs):
        pts = np.asarray(points_list[i], np.float32)
        n = counts[i]
        xs_np[bi, :n, 0] = pts[:, 0]
        ys_np[bi, :n, 0] = pts[:, 1]
        st_np[bi] = float(st_sizes[i])

    out = _post_prob_batched(
        jnp.asarray(st_np),
        jnp.asarray(xs_np), jnp.asarray(ys_np),
        jnp.asarray(cx_np), jnp.asarray(cy_np),
        sigma=sigma, bg_ratio=background_ratio,
        use_background=use_background, n_pad=n_pad, tile_p=tile_p)

    prob_list = [None] * len(points_list)
    for bi, i in enumerate(idxs):
        n = counts[i]
        if use_background:
            prob = jnp.concatenate(
                [out[bi, :n, :CC], out[bi, n_pad:n_pad + 1, :CC]], axis=0)
        else:
            prob = out[bi, :n, :CC]
        prob_list[i] = prob
    return prob_list


def post_prob_reference_np(points_list, st_sizes, *, sigma, c_size, stride,
                           background_ratio, use_background):
    """float64 numpy reference reproducing the PyTorch forward exactly."""
    C = c_size // stride
    cood = (np.arange(0, c_size, step=stride, dtype=np.float64) + stride / 2.0)[None, :]
    probs = []
    for pts, st in zip(points_list, st_sizes):
        pts = np.asarray(pts, np.float64)
        n = pts.shape[0]
        if n == 0:
            probs.append(None)
            continue
        x = pts[:, 0:1]
        y = pts[:, 1:2]
        x_dis = -2.0 * (x @ cood) + x * x + cood * cood
        y_dis = -2.0 * (y @ cood) + y * y + cood * cood
        dis = (y_dis[:, :, None] + x_dis[:, None, :]).reshape(n, -1)
        if use_background:
            min_dis = np.clip(dis.min(axis=0, keepdims=True), 0.0, None)
            d = float(st) * background_ratio
            bg_dis = (d - np.sqrt(min_dis)) ** 2
            dis = np.concatenate([dis, bg_dis], axis=0)
        logit = -dis / (2.0 * sigma ** 2)
        logit = logit - logit.max(axis=0, keepdims=True)
        e = np.exp(logit)
        probs.append(e / e.sum(axis=0, keepdims=True))
    return probs


if __name__ == "__main__":
    # Module config (deterministic, synthetic)
    sigma = 8.0
    c_size = 16
    stride = 2
    background_ratio = 0.15

    key = jax.random.PRNGKey(0)
    k1, k2, k3 = jax.random.split(key, 3)

    # batch of 3 images with ragged point counts (middle one empty -> None)
    pts0 = jax.random.uniform(k1, (5, 2), dtype=jnp.float32) * c_size
    pts1 = jnp.zeros((0, 2), jnp.float32)
    pts2 = jax.random.uniform(k2, (3, 2), dtype=jnp.float32) * c_size
    points = [pts0, pts1, pts2]
    st_sizes = [float(v) for v in
                jax.random.uniform(k3, (3,), minval=float(c_size),
                                   maxval=2.0 * c_size, dtype=jnp.float32)]

    for use_background in (True, False):
        prob_list = post_prob_forward(
            points, st_sizes, sigma=sigma, c_size=c_size, stride=stride,
            background_ratio=background_ratio, use_background=use_background)
        ref_list = post_prob_reference_np(
            points, st_sizes, sigma=sigma, c_size=c_size, stride=stride,
            background_ratio=background_ratio, use_background=use_background)

        for p, r in zip(prob_list, ref_list):
            if r is None:
                assert p is None
                continue
            p = np.asarray(jax.block_until_ready(p))
            assert p.shape == r.shape, (p.shape, r.shape)
            np.testing.assert_allclose(p, r, rtol=1e-5, atol=1e-5)
            # softmax over the point axis sums to 1 per pixel
            np.testing.assert_allclose(p.sum(axis=0),
                                       np.ones(p.shape[1], np.float64),
                                       rtol=1e-5, atol=1e-5)

    print("KERNEL_OK")
</pallas_src>

<mosaic_0001>
module attributes {stable_mosaic.version = 11 : i64} {
  func.func @_post_prob_kernel(%arg0: i32, %arg1: i32, %arg2: memref<2xf32, #tpu.memory_space<smem>>, %arg3: memref<1x8x1xf32, #tpu.memory_space<vmem>>, %arg4: memref<1x8x1xf32, #tpu.memory_space<vmem>>, %arg5: memref<1x128xf32, #tpu.memory_space<vmem>>, %arg6: memref<1x128xf32, #tpu.memory_space<vmem>>, %arg7: memref<1x16x128xf32, #tpu.memory_space<vmem>>) attributes {dimension_semantics = [#tpu.dimension_semantics<parallel>, #tpu.dimension_semantics<parallel>], iteration_bounds = array<i64: 2, 1>, scalar_prefetch = 1 : i64, scratch_operands = 0 : i64, tpu.core_type = #tpu.core_type<tc>, window_params = [{transform_indices = @transform_0, window_bounds = array<i64: 1, 8, 1>}, {transform_indices = @transform_1, window_bounds = array<i64: 1, 8, 1>}, {transform_indices = @transform_2, window_bounds = array<i64: 1, 128>}, {transform_indices = @transform_3, window_bounds = array<i64: 1, 128>}, {transform_indices = @transform_4, window_bounds = array<i64: 1, 16, 128>}]} {
    %c0 = arith.constant 0 : index
    %c0_0 = arith.constant 0 : index
    %c0_1 = arith.constant 0 : index
    %0 = vector.load %arg3[%c0, %c0_0, %c0_1] : memref<1x8x1xf32, #tpu.memory_space<vmem>>, vector<1x8x1xf32>
    %1 = vector.shape_cast %0 : vector<1x8x1xf32> to vector<8x1xf32>
    %c0_2 = arith.constant 0 : index
    %c0_3 = arith.constant 0 : index
    %c0_4 = arith.constant 0 : index
    %2 = vector.load %arg4[%c0_2, %c0_3, %c0_4] : memref<1x8x1xf32, #tpu.memory_space<vmem>>, vector<1x8x1xf32>
    %3 = vector.shape_cast %2 : vector<1x8x1xf32> to vector<8x1xf32>
    %c0_5 = arith.constant 0 : index
    %c0_6 = arith.constant 0 : index
    %4 = vector.load %arg5[%c0_5, %c0_6] : memref<1x128xf32, #tpu.memory_space<vmem>>, vector<1x128xf32>
    %c0_7 = arith.constant 0 : index
    %c0_8 = arith.constant 0 : index
    %5 = vector.load %arg6[%c0_7, %c0_8] : memref<1x128xf32, #tpu.memory_space<vmem>>, vector<1x128xf32>
    %6 = vector.broadcast %4 : vector<1x128xf32> to vector<8x128xf32>
    %7 = vector.broadcast %1 : vector<8x1xf32> to vector<8x128xf32>
    %8 = arith.subf %6, %7 : vector<8x128xf32>
    %9 = vector.broadcast %5 : vector<1x128xf32> to vector<8x128xf32>
    %10 = vector.broadcast %3 : vector<8x1xf32> to vector<8x128xf32>
    %11 = arith.subf %9, %10 : vector<8x128xf32>
    %12 = arith.mulf %8, %8 : vector<8x128xf32>
    %13 = arith.mulf %11, %11 : vector<8x128xf32>
    %14 = arith.addf %12, %13 : vector<8x128xf32>
    %cst = arith.constant dense<0x7F800000> : vector<128xf32>
    %15 = vector.multi_reduction <minimumf>, %14, %cst [0] : vector<8x128xf32> to vector<128xf32>
    %16 = vector.shape_cast %15 : vector<128xf32> to vector<1x128xf32>
    %17 = arith.index_cast %arg0 : i32 to index
    %18 = memref.load %arg2[%17] : memref<2xf32, #tpu.memory_space<smem>>
    %cst_9 = arith.constant 1.500000e-01 : f32
    %19 = arith.mulf %18, %cst_9 : f32
    %20 = math.sqrt %16 : vector<1x128xf32>
    %21 = vector.broadcast %19 : f32 to vector<1x128xf32>
    %22 = arith.subf %21, %20 : vector<1x128xf32>
    %23 = arith.mulf %22, %22 : vector<1x128xf32>
    %24 = arith.minimumf %16, %23 : vector<1x128xf32>
    %25 = vector.broadcast %24 : vector<1x128xf32> to vector<8x128xf32>
    %26 = arith.subf %25, %14 : vector<8x128xf32>
    %cst_10 = arith.constant 7.812500e-03 : f32
    %27 = vector.broadcast %cst_10 : f32 to vector<8x128xf32>
    %28 = arith.mulf %26, %27 : vector<8x128xf32>
    %29 = math.exp %28 : vector<8x128xf32>
    %30 = arith.subf %24, %23 : vector<1x128xf32>
    %cst_11 = arith.constant 7.812500e-03 : f32
    %31 = vector.broadcast %cst_11 : f32 to vector<1x128xf32>
    %32 = arith.mulf %30, %31 : vector<1x128xf32>
    %33 = math.exp %32 : vector<1x128xf32>
    %cst_12 = arith.constant dense<0.000000e+00> : vector<128xf32>
    %34 = vector.multi_reduction <add>, %29, %cst_12 [0] : vector<8x128xf32> to vector<128xf32>
    %35 = vector.shape_cast %34 : vector<128xf32> to vector<1x128xf32>
    %36 = arith.addf %35, %33 : vector<1x128xf32>
    %cst_13 = arith.constant 1.000000e+00 : f32
    %37 = vector.broadcast %cst_13 : f32 to vector<1x128xf32>
    %38 = arith.divf %37, %36 : vector<1x128xf32>
    %39 = vector.broadcast %38 : vector<1x128xf32> to vector<8x128xf32>
    %40 = arith.mulf %29, %39 : vector<8x128xf32>
    %c0_14 = arith.constant 0 : index
    %c0_15 = arith.constant 0 : index
    %c0_16 = arith.constant 0 : index
    %41 = vector.load %arg7[%c0_14, %c0_15, %c0_16] : memref<1x16x128xf32, #tpu.memory_space<vmem>>, vector<1x8x128xf32>
    %42 = vector.shape_cast %41 : vector<1x8x128xf32> to vector<8x128xf32>
    %43 = vector.shape_cast %40 : vector<8x128xf32> to vector<1x8x128xf32>
    tpu.vector_store %arg7[%c0_14, %c0_15, %c0_16], %43 {strides = array<i32>} : memref<1x16x128xf32, #tpu.memory_space<vmem>>, vector<1x8x128xf32>,
    %44 = arith.mulf %33, %38 : vector<1x128xf32>
    %45 = vector.shape_cast %44 : vector<1x128xf32> to vector<1x128xf32>
    %46 = vector.broadcast %45 : vector<1x128xf32> to vector<8x128xf32>
    %c0_17 = arith.constant 0 : index
    %c8 = arith.constant 8 : index
    %c0_18 = arith.constant 0 : index
    %47 = vector.load %arg7[%c0_17, %c8, %c0_18] : memref<1x16x128xf32, #tpu.memory_space<vmem>>, vector<1x8x128xf32>
    %48 = vector.shape_cast %47 : vector<1x8x128xf32> to vector<8x128xf32>
    %49 = vector.shape_cast %46 : vector<8x128xf32> to vector<1x8x128xf32>
    tpu.vector_store %arg7[%c0_17, %c8, %c0_18], %49 {strides = array<i32>} : memref<1x16x128xf32, #tpu.memory_space<vmem>>, vector<1x8x128xf32>,
    return
  }
  func.func @transform_0(%arg0: i32, %arg1: i32, %arg2: memref<2xf32, #tpu.memory_space<smem>>) -> (i32, i32, i32) {
    %c0_i32 = arith.constant 0 : i32
    %c0_i32_0 = arith.constant 0 : i32
    %c0_i32_1 = arith.constant 0 : i32
    return %arg0, %c0_i32, %c0_i32_0 : i32, i32, i32
  }
  func.func @transform_1(%arg0: i32, %arg1: i32, %arg2: memref<2xf32, #tpu.memory_space<smem>>) -> (i32, i32, i32) {
    %c0_i32 = arith.constant 0 : i32
    %c0_i32_0 = arith.constant 0 : i32
    %c0_i32_1 = arith.constant 0 : i32
    return %arg0, %c0_i32, %c0_i32_0 : i32, i32, i32
  }
  func.func @transform_2(%arg0: i32, %arg1: i32, %arg2: memref<2xf32, #tpu.memory_space<smem>>) -> (i32, i32) {
    %c0_i32 = arith.constant 0 : i32
    %c0_i32_0 = arith.constant 0 : i32
    return %c0_i32, %arg1 : i32, i32
  }
  func.func @transform_3(%arg0: i32, %arg1: i32, %arg2: memref<2xf32, #tpu.memory_space<smem>>) -> (i32, i32) {
    %c0_i32 = arith.constant 0 : i32
    %c0_i32_0 = arith.constant 0 : i32
    return %c0_i32, %arg1 : i32, i32
  }
  func.func @transform_4(%arg0: i32, %arg1: i32, %arg2: memref<2xf32, #tpu.memory_space<smem>>) -> (i32, i32, i32) {
    %c0_i32 = arith.constant 0 : i32
    %c0_i32_0 = arith.constant 0 : i32
    return %arg0, %c0_i32, %arg1 : i32, i32, i32
  }
}

</mosaic_0001>

<bundles_post_ra>
// kernel: tpu_custom_call.1
= control target key start
LH: loop header
LB: loop body
LE: loop exit
PB: predicated region body
PF: predicated region fallthrough
CT: control target
= control target key end

     0   :  { %s793_s0 = inlined_call_operand.vmem [shape: f32[2], index: 0, kind: input, shape index: {}]   ;;  %s794_s1 = inlined_call_operand.vmem [shape: f32[2,8,1], index: 1, kind: input, shape index: {}]   ;;  %s795_s2 = inlined_call_operand.vmem [shape: f32[2,8,1], index: 2, kind: input, shape index: {}]   ;;  %s796_s3 = inlined_call_operand.vmem [shape: f32[1,128], index: 3, kind: input, shape index: {}]   ;;  %s797_s4 = inlined_call_operand.vmem [shape: f32[1,128], index: 4, kind: input, shape index: {}]   ;;  %s798_s5 = inlined_call_operand.hbm [shape: f32[2,16,128], index: 5, kind: output, shape index: {}]  }
   0x1   :  { %s10_s20 = sshll.u32 %s793_s0, 4  ;;  %s11_s20 = int_to_ptr.vmem [resolvable:$true] %s10_s20 }
   0x2   :  { %s539_s21 = scalar_lea.vmem %s11_s20, 16  ;;  %p544_p1 = scmp.lt.s32.totalorder %s11_s20, %s11_s20 }
   0x3   :  { %p540_p0 = scmp.ne.s32.totalorder %s11_s20, %s539_s21  ;;  %p545_p2 = scmp.lt.s32.totalorder %s539_s21, %s539_s21 }
   0x5   :  { %p546_p3 = por %p545_p2, %p544_p1 }
   0x7   :  { %p547_p4 = pnand %p546_p3, %p540_p0 }
   0x9   :  { %550 = shalt.err (!%p547_p4)  }
   0xa   :  { %s631_s22 = smov [#allocation3]  }
   0xb   :  { %13 = dma.vmem_to_smem %s11_s20, 16, %s631_s22, [#allocation2] }
   0xc   :  { %601 = dma.done.wait [#allocation2], 16 }
   0xd   :  { %602 = vsyncadd [#allocation2], 4294967280 }
   0xe   :  { %15 = sfence }
   0xf   :  { %16 = vsyncpa [#allocation5], 0 }
  0x10   :  { %18 = vsyncpa [#allocation5 + $0x1], 0  ;;  %s669_s23 = smov 0   ;;  %s671_s24 = smov 0  }
  0x11   :  { %s673_s0 = smov 0   ;;  %s675_s25 = smov 0  }
  0x12   :  { %s677_s26 = smov 0   ;;  %s679_s27 = smov 0  }
  0x13 LB: > { %s453_s28 = sadd.s32 4294967295, %s629_s27   ;;  %s454_s29 = sadd.s32 4294967294, %s629_s27   ;;  %s629_s27 = sphi %s679_s27, %s24_s27   ;;  %s625_s26 = sphi %s677_s26, %s805_s26   ;;  %s621_s25 = sphi %s675_s25, %s804_s25   ;;  %s617_s0 = sphi %s673_s0, %s803_s0   ;;  %s613_s24 = sphi %s671_s24, %s802_s24   ;;  %s609_s23 = sphi %s669_s23, %s801_s23  }
  0x14   : > { %s36_s30 = sadd.s32 1, %s625_s26  ;;  %s149_s6 = sadd.s32 1, %s617_s0 }
  0x15   : > { %p38_p5 = scmp.ge.s32.totalorder %s36_s30, 2  ;;  %p159_p6 = scmp.ne.s32.totalorder %s617_s0, %s613_s24 }
  0x16   : > { %p160_p7 = scmp.eq.s32.totalorder %s453_s28, 1  ;;  %p165_p8 = scmp.ne.s32.totalorder %s613_s24, %s609_s23 }
  0x17   : > { %s807_s30 = smov (%p38_p5, %s36_s30), 0  ;;  %p166_p10 = scmp.eq.s32.totalorder %s454_s29, 1 }
  0x18   : > { %p709_p9 = por %p160_p7, %p159_p6  ;;  %s144_s8 = ssub.s32 %s625_s26, %s807_s30 }
  0x19   : > { %p459_p11 = scmp.ge.s32.totalorder %s629_s27, 1  ;;  %p147_p12 = scmp.eq.s32.totalorder %s144_s8, 0 }
  0x1a   : > { %p716_p13 = por %p166_p10, %p165_p8  ;;  %p210_p0 = scmp.lt.s32.totalorder %s629_s27, 3 }
  0x1b   : > { %s722_s10 = scalar_select %p147_p12, %s617_s0, %s149_s6  }
  0x1c   : > { %p211_p1 = pnand %p459_p11, %p210_p0 }
  0x1d   : > { %p245_p2 = scmp.lt.s32.totalorder (!%p211_p1), %s621_s25, 1  ;;  %s296_s28 = sld [smem:[#allocation3 + %s621_s25]] (!%p211_p1) }
  0x1e   : > { %214 = sbr.rel (%p211_p1) target bundleno = 274 (0x112), region = 36  ;;  %s242_s6 = sand.u32 (!%p211_p1), 1, %s613_s24  }
  0x1f   : > { %s460_s8 = sshll.u32 (!%p211_p1), %s242_s6, 4  ;;  %s748_s17 = scalar_lea.sflag (!%p211_p1), [#allocation5], %s242_s6 }
  0x23   : > { %v632_v0 = vmov 0   ;;  %s246_s11 = scalar_select %p245_p2, %s621_s25, 1  ;;  %v463_v3 = vld [vmem:[%s796_s3] ss:$0 sm:$0xff] }
  0x24   : > { %530 = vset.pattern.permute.xlu0 %v632_v0  ;;  %v464_v5 = vld [vmem:[%s797_s4] ss:$0 sm:$0xff]  ;;  %s297_s29 = smul.f32 0.15, %s296_s28 }
  0x25   : > { %s461_s12 = sshll.u32 %s246_s11, 3  ;;  %s470_s11 = sshll.u32 %s621_s25, 8 }
  0x26   : > { %s248_s15 = scalar_lea.vmem %s794_s1, %s461_s12  ;;  %s252_s18 = scalar_lea.vmem %s795_s2, %s461_s12  ;;  %v305_v20 = vstv %s297_s29 }
  0x27   : > { %v259_v1 = vld [vmem:[%s248_s15] sm:$0xff]  ;;  %s244_s12 = scalar_lea.vmem [#allocation4], %s460_s8  ;;  %s744_s16 = scalar_lea.hbm %s798_s5, %s470_s11 }
  0x28   : > { %271 = vperm.xlu0 %530, %v259_v1   ;;  %v260_v2 = vld [vmem:[%s252_s18] sm:$0xff]  ;;  %s345_s13 = sshll.u32 %s244_s12, 4  ;;  %s633_s18 = smov [#allocation4]   ;;  %s746_s13 = int_to_ptr.vmem [resolvable:$true] %s345_s13 }
  0x29   : > { %s551_s25 = scalar_lea.vmem %s746_s13, 256  ;;  %s555_s19 = sshll.u32 %s633_s18, 4  ;;  %s556_s19 = int_to_ptr.vmem [resolvable:$false] %s555_s19 }
  0x2a   : > { %p552_p3 = scmp.ne.s32.totalorder %s746_s13, %s551_s25  ;;  %s557_s20 = scalar_lea.vmem %s556_s19, 512 }
  0x2b   : > { %p558_p6 = scmp.lt.s32.totalorder %s746_s13, %s556_s19  ;;  %p559_p7 = scmp.lt.s32.totalorder %s557_s20, %s551_s25 }
  0x2c   : > { %283 = vperm.xlu0 %530, %v260_v2   ;;  %p553_p4 = pnand %p552_p3, %p709_p9 }
  0x2d   : > { %p560_p8 = por %p559_p7, %p558_p6 }
  0x2e   : > { %p554_p5 = pneg %p553_p4 }
  0x30   : > { %p561_p10 = pnand %p560_p8, %p554_p5 }
  0xa3   : > { %v272_v4 = vpop.permute.xlu0 %271 }
  0xa4   : > { %v274_v6 = vsub.f32 %v463_v3, %v272_v4 }
  0xa6   : > { %v287_v9 = vmul.f32 %v274_v6, %v274_v6 }
  0xa7   : > { %v284_v7 = vpop.permute.xlu0 %283 }
  0xa8   : > { %v286_v8 = vsub.f32 %v464_v5, %v284_v7 }
  0xaa   : > { %v288_v10 = vmul.f32 %v286_v8, %v286_v8 }
  0xac   : > { %v289_v11 = vadd.f32 %v288_v10, %v287_v9 }
  0xae   : > { %v290_v12 = vrot.slane %v289_v11, 4 }
  0xb0   : > { %v291_v13 = vmin.f32 %v289_v11, %v290_v12 }
  0xb2   : > { %v292_v14 = vrot.slane %v291_v13, 2 }
  0xb4   : > { %v293_v15 = vmin.f32 %v291_v13, %v292_v14 }
  0xb6   : > { %v294_v16 = vrot.slane %v293_v15, 1 }
  0xb8   : > { %v295_v17 = vmin.f32 %v293_v15, %v294_v16 }
  0xba   : > { %531 = vrsqrt.f32 %v295_v17  ;;  %vm300_vm0 = vcmp.eq.f32.partialorder %v295_v17, inf  ;;  %v303_v21 = vand.u32 2147483648, %v295_v17  ;;  %vm302_vm1 = vcmp.eq.f32.partialorder %v295_v17, 0.0 }
  0xc7   : > { %v532_v18 = vpop.eup %531 }
  0xc8   : > { %v299_v19 = vmul.f32 %v532_v18, %v295_v17 }
  0xca   : > { %v301_v22 = vsel %vm300_vm0, %v295_v17, %v299_v19 }
  0xcb   : > { %v304_v23 = vsel %vm302_vm1, %v303_v21, %v301_v22 }
  0xcc   : > { %v306_v24 = vsub.f32 %v305_v20, %v304_v23 }
  0xce   : > { %v307_v25 = vmul.f32 %v306_v24, %v306_v24 }
  0xd0   : > { %v308_v26 = vmin.f32 %v295_v17, %v307_v25 }
  0xd2   : > { %v309_v27 = vsub.f32 %v308_v26, %v289_v11  ;;  %v313_v30 = vsub.f32 %v308_v26, %v307_v25 }
  0xd4   : > { %v310_v28 = vmul.f32 0.0078125, %v309_v27  ;;  %v314_v31 = vmul.f32 0.0078125, %v313_v30 }
  0xd6   : > { %v311_v29 = vmul.f32 1.442695, %v310_v28  ;;  %v315_v32 = vmul.f32 1.442695, %v314_v31 }
  0xd8   : > { %533 = vpow2.f32 %v311_v29 }
  0xd9   : > { %535 = vpow2.f32 %v315_v32 }
  0xe5   : > { %v534_v33 = vpop.eup %533 }
  0xe6   : > { %v317_v34 = vrot.slane %v534_v33, 4  ;;  %v536_v40 = vpop.eup %535 }
  0xe8   : > { %v318_v35 = vadd.f32 %v534_v33, %v317_v34 }
  0xea   : > { %v319_v36 = vrot.slane %v318_v35, 2 }
  0xec   : > { %v320_v37 = vadd.f32 %v319_v36, %v318_v35 }
  0xee   : > { %v321_v38 = vrot.slane %v320_v37, 1 }
  0xf0   : > { %v322_v39 = vadd.f32 %v321_v38, %v320_v37 }
  0xf2   : > { %v323_v41 = vadd.f32 %v536_v40, %v322_v39 }
  0xf4   : > { %537 = vrcp.f32 %v323_v41 }
 0x101   : > { %v538_v42 = vpop.eup %537 }
 0x102   : > { %v326_v43 = vmul.f32 %v538_v42, %v534_v33  ;;  %v328_v44 = vmul.f32 %v538_v42, %v536_v40 }
 0x104   : > { %327 = vst [vmem:[%s244_s12] sm:$0xff] %v326_v43  ;;  %329 = vst [vmem:[%s244_s12 + $0x8] sm:$0xff] %v328_v44 }
 0x105   : > { %564 = shalt.err (!%p561_p10)
}
 0x106   : > { %s565_s21 = scalar_lea.hbm %s744_s16, 256  ;;  %s569_s29 = scalar_lea.hbm %s798_s5, 512 }
 0x107   : > { %p566_p11 = scmp.ne.s32.totalorder %s744_s16, %s565_s21  ;;  %p570_p1 = scmp.lt.s32.totalorder %s744_s16, %s798_s5 }
 0x108   : > { %p571_p2 = scmp.lt.s32.totalorder %s569_s29, %s565_s21 }
 0x109   : > { %p567_p12 = pnand %p566_p11, %p709_p9 }
 0x10a   : > { %p572_p3 = por %p571_p2, %p570_p1 }
 0x10b   : > { %p568_p0 = pneg %p567_p12 }
 0x10d   : > { %p573_p4 = pnand %p572_p3, %p568_p0 }
 0x10f   : > { %576 = shalt.err (!%p573_p4)
}
 0x110   : > { %s634_s11 = smov 128   ;;  %s635_s12 = smov 8  }
 0x111   : > { %471 = dma.vmem_to_hbm [thread:$0]  (%p709_p9), %s746_s13, 256, %s744_s16, %s748_s17, %s634_s11, %s634_s11, %s635_s12  }
 0x112 PF: > { %p477_p5 = scmp.ge.s32.totalorder %s629_s27, 2  ;;  %s360_s14 = sand.u32 1, %s609_s23  }
 0x113   : > { %s361_s15 = scalar_lea.sflag [#allocation5], %s360_s14 }
 0x114   : > { %p474_p6 = pnand %p477_p5, %p716_p13 }
 0x116   : > { %p475_p7 = pneg %p474_p6 }
 0x118   : > { %604 = dma.done.wait (%p475_p7), %s361_s15, 256  }
 0x119   : > { %606 = vsyncadd (%p475_p7), %s361_s15, 4294967040  ;;  %s24_s27 = sadd.s32 1, %s629_s27   ;;  %s801_s23 = smov %s613_s24 }
 0x11a   : > { %p21_p8 = scmp.ge.s32.totalorder %s24_s27, 4   ;;  %s802_s24 = smov %s617_s0 }
 0x11b   : > { %s803_s0 = smov %s722_s10  ;;  %s804_s25 = smov %s625_s26 }
 0x11c   : > { %s805_s26 = smov %s807_s30  ;;  %23 = sbr.rel (!%p21_p8) target bundleno = 19 (0x13), region = 80 }
 0x121   :  { %366 = vsyncpa [#allocation5], 1 }
 0x122   :  { %368 = vsyncpa [#allocation5 + $0x1], 1 }

</bundles_post_ra>
